<compile_context>
chip_gen: v7x
topology: tpu7x:2x2x1
jax: 0.10.0
libtpu: 0.0.40
codegen_flags: <defaults>
</compile_context>

<pallas_src>
import functools

import jax
import jax.numpy as jnp
import numpy as np
from jax.experimental import pallas as pl
from jax.experimental.pallas import tpu as pltpu

HIDDEN = 256
OUT_LANES = 128            # lane-dense output slab width (also padded action width)
LP_LANE = 126              # output-slab lane holding log_prob
VAL_LANE = 127             # output-slab lane holding value
MAX_TILE_B = 512           # max batch rows per grid step
HALF_LOG_2PI = 0.5 * float(np.log(2.0 * np.pi))


def actor_critic_kernel(
    state_ref,             # (TB, S)    f32
    w1f_ref, b1f_ref,      # (S, 2H) bf16, (1, 2H) f32   fused actor||critic layer 1
    aw2_ref, ab2_ref,      # (H, H) bf16, (1, H) f32     actor layer 2
    cw2_ref, cb2_ref,      # (H, H) bf16, (1, H) f32     critic layer 2
    mw_ref, mb_ref,        # (H, 128) bf16, (1, 128) f32 lane-padded mean head
    std_ref,               # (1, 128) f32  exp(log_std), padded lanes = 1
    itv_ref,               # (1, 128) f32  1/(2*std^2)
    nllc_ref,              # (1, 128) f32  log_std + 0.5*log(2pi)
    cw3_ref, cb3_ref,      # (1, H) f32, (1, 1) f32      critic head (row vector)
    noise_ref,             # (TB, A) f32   N(0,1)
    out_ref,               # (TB, 128) f32 packed output slab
    noise_scr,             # (TB, 128) f32 VMEM scratch for lane-padded noise
    *, action_dim,
):
    # ---- expand (TB, A) noise to a lane-dense (TB, 128) vreg slab in VMEM ----
    noise_scr[...] = jnp.zeros_like(noise_scr)
    noise_scr[:, 0:action_dim] = noise_ref[...]
    noise = noise_scr[...]

    # ---- fused first layer: one N=512 bf16 matmul instead of two N=256 ----
    s = state_ref[...].astype(jnp.bfloat16)
    h1 = jnp.dot(s, w1f_ref[...], preferred_element_type=jnp.float32) + b1f_ref[...]
    h1 = jnp.maximum(h1, 0.0)
    ha = h1[:, :HIDDEN].astype(jnp.bfloat16)      # actor branch
    hc = h1[:, HIDDEN:].astype(jnp.bfloat16)      # critic branch

    # ---- actor second layer (bf16 MXU, f32 accumulate) ----
    ha = jnp.dot(ha, aw2_ref[...], preferred_element_type=jnp.float32) + ab2_ref[...]
    ha = jnp.maximum(ha, 0.0).astype(jnp.bfloat16)

    # ---- mean head (lane-padded to 128 cols -> dense MXU output) + tanh ----
    mean = jnp.tanh(
        jnp.dot(ha, mw_ref[...], preferred_element_type=jnp.float32) + mb_ref[...]
    )

    # ---- Normal(mean, std): reparameterized sample, clamp, masked log_prob ----
    std = std_ref[...]
    action = jnp.clip(mean + std * noise, -1.0, 1.0)

    lane = jax.lax.broadcasted_iota(jnp.int32, action.shape, 1)
    d = action - mean
    lp = -(d * d) * itv_ref[...] - nllc_ref[...]
    lp = jnp.where(lane < action_dim, lp, 0.0)        # ignore padded action lanes
    log_prob = jnp.sum(lp, axis=-1, keepdims=True)    # (TB, 1)

    # ---- critic second layer (bf16 MXU) ----
    hc = jnp.dot(hc, cw2_ref[...], preferred_element_type=jnp.float32) + cb2_ref[...]
    hc = jnp.maximum(hc, 0.0)
    # critic head: VPU multiply + cross-lane reduce (skip the 1-lane MXU matmul)
    value = jnp.sum(hc * cw3_ref[...], axis=-1, keepdims=True) + cb3_ref[...]

    # ---- pack into one lane-dense (TB, 128) slab -> unmasked stores ----
    out = action                                      # padded lanes are 0
    out = jnp.where(lane == LP_LANE, log_prob, out)
    out = jnp.where(lane == VAL_LANE, value, out)
    out_ref[...] = out


def pack_params(params, action_dim):
    """Repack natural (in,out)-layout f32 params into the kernel layout (done once)."""
    A = action_dim
    mw_pad = jnp.zeros((HIDDEN, OUT_LANES), jnp.float32).at[:, :A].set(params["mw"])
    mb_pad = jnp.zeros((1, OUT_LANES), jnp.float32).at[:, :A].set(params["mb"])
    ls_pad = jnp.zeros((1, OUT_LANES), jnp.float32).at[:, :A].set(params["log_std"])

    std = jnp.exp(ls_pad)                       # padded lanes -> std = 1
    inv_two_var = 1.0 / (2.0 * std * std)       # 1/(2*sigma^2)
    nll_const = ls_pad + HALF_LOG_2PI           # log_std + 0.5*log(2pi)

    bf16 = jnp.bfloat16
    return dict(
        w1f=jnp.concatenate([params["aw1"], params["cw1"]], axis=1).astype(bf16),
        b1f=jnp.concatenate([params["ab1"], params["cb1"]], axis=1),
        aw2=params["aw2"].astype(bf16), ab2=params["ab2"],
        cw2=params["cw2"].astype(bf16), cb2=params["cb2"],
        mw=mw_pad.astype(bf16), mb=mb_pad,
        std=std, inv_two_var=inv_two_var, nll_const=nll_const,
        cw3=params["cw3"].T,                    # (1, 256)
        cb3=params["cb3"],                      # (1, 1)
    )


def _round_up(x, m):
    return (x + m - 1) // m * m


def _choose_tile(batch, max_tile=MAX_TILE_B):
    """Adaptive batch tile: big enough to amortize grid-step overhead, small enough
    not to pad tiny batches, and >=2 grid steps when there is enough work so v7x's
    two TensorCores both get a share."""
    rb = _round_up(batch, 8)
    tile = min(max_tile, rb)
    if rb >= 32 and pl.cdiv(rb, tile) < 2:
        tile = _round_up(pl.cdiv(rb, 2), 8)
    return tile


def actor_critic_forward(state, packed, noise, *, tile_b=None):
    """state: (B, S) f32, noise: (B, A) f32 ~ N(0,1). Returns (action, log_prob, value)."""
    B, S = state.shape
    A = noise.shape[-1]
    assert A <= LP_LANE, "action_dim must fit below the packed log_prob/value lanes"

    if tile_b is None:
        tile_b = _choose_tile(B)
    n_tiles = pl.cdiv(B, tile_b)
    b_pad = n_tiles * tile_b

    # Row-pad only when needed (skipped entirely when B % tile_b == 0).
    if b_pad != B:
        state = jnp.zeros((b_pad, S), state.dtype).at[:B, :].set(state)
        noise = jnp.zeros((b_pad, A), noise.dtype).at[:B, :].set(noise)

    batch = lambda i: (i, 0)   # batch-tiled operands
    const = lambda i: (0, 0)   # VMEM-resident weights (same block every step)

    kernel = functools.partial(actor_critic_kernel, action_dim=A)

    out = pl.pallas_call(
        kernel,
        out_shape=jax.ShapeDtypeStruct((b_pad, OUT_LANES), jnp.float32),
        grid_spec=pltpu.PrefetchScalarGridSpec(
            num_scalar_prefetch=0,
            grid=(n_tiles,),
            in_specs=[
                pl.BlockSpec((tile_b, S), batch),
                pl.BlockSpec(packed["w1f"].shape, const),
                pl.BlockSpec(packed["b1f"].shape, const),
                pl.BlockSpec(packed["aw2"].shape, const),
                pl.BlockSpec(packed["ab2"].shape, const),
                pl.BlockSpec(packed["cw2"].shape, const),
                pl.BlockSpec(packed["cb2"].shape, const),
                pl.BlockSpec(packed["mw"].shape, const),
                pl.BlockSpec(packed["mb"].shape, const),
                pl.BlockSpec(packed["std"].shape, const),
                pl.BlockSpec(packed["inv_two_var"].shape, const),
                pl.BlockSpec(packed["nll_const"].shape, const),
                pl.BlockSpec(packed["cw3"].shape, const),
                pl.BlockSpec(packed["cb3"].shape, const),
                pl.BlockSpec((tile_b, A), batch),
            ],
            out_specs=pl.BlockSpec((tile_b, OUT_LANES), batch),
            scratch_shapes=[pltpu.VMEM((tile_b, OUT_LANES), jnp.float32)],
        ),
        compiler_params=pltpu.CompilerParams(
            dimension_semantics=("parallel",),   # shard batch tiles across TCs (v7x)
            vmem_limit_bytes=32 << 20,
        ),
    )(
        state,
        packed["w1f"], packed["b1f"],
        packed["aw2"], packed["ab2"],
        packed["cw2"], packed["cb2"],
        packed["mw"], packed["mb"],
        packed["std"], packed["inv_two_var"], packed["nll_const"],
        packed["cw3"], packed["cb3"],
        noise,
    )

    action = out[:B, :A]
    log_prob = out[:B, LP_LANE]
    value = out[:B, VAL_LANE:VAL_LANE + 1]
    return action, log_prob, value


def init_params(key, state_dim, action_dim):
    """Deterministic synthetic parameters (weights stored as (in, out))."""
    keys = jax.random.split(key, 6)

    def lin(k, fan_in, fan_out):
        bound = 1.0 / np.sqrt(fan_in)
        kw, kb = jax.random.split(k)
        w = jax.random.uniform(kw, (fan_in, fan_out), jnp.float32, -bound, bound)
        b = jax.random.uniform(kb, (1, fan_out), jnp.float32, -bound, bound)
        return w, b

    aw1, ab1 = lin(keys[0], state_dim, HIDDEN)
    aw2, ab2 = lin(keys[1], HIDDEN, HIDDEN)
    mw, mb = lin(keys[2], HIDDEN, action_dim)
    cw1, cb1 = lin(keys[3], state_dim, HIDDEN)
    cw2, cb2 = lin(keys[4], HIDDEN, HIDDEN)
    cw3, cb3 = lin(keys[5], HIDDEN, 1)
    log_std = jnp.zeros((1, action_dim), jnp.float32)  # nn.Parameter(torch.zeros(A))

    return dict(
        aw1=aw1, ab1=ab1, aw2=aw2, ab2=ab2,
        mw=mw, mb=mb, log_std=log_std,
        cw1=cw1, cb1=cb1, cw2=cw2, cb2=cb2, cw3=cw3, cb3=cb3,
    )


def reference_forward(state, params, noise):
    """Pure-JAX f32 reference of the PyTorch forward semantics."""
    relu = lambda x: jnp.maximum(x, 0.0)
    h = relu(state @ params["aw1"] + params["ab1"])
    h = relu(h @ params["aw2"] + params["ab2"])
    mean = jnp.tanh(h @ params["mw"] + params["mb"])
    std = jnp.exp(params["log_std"])
    action = jnp.clip(mean + std * noise, -1.0, 1.0)
    lp = (
        -((action - mean) ** 2) / (2.0 * std * std)
        - params["log_std"]
        - 0.5 * jnp.log(2.0 * jnp.pi)
    ).sum(axis=-1)
    c = relu(state @ params["cw1"] + params["cb1"])
    c = relu(c @ params["cw2"] + params["cb2"])
    value = c @ params["cw3"] + params["cb3"]
    return action, lp, value


if __name__ == "__main__":
    B, STATE_DIM, ACTION_DIM = 8, 16, 4

    key = jax.random.PRNGKey(0)
    k_params, k_state, k_noise = jax.random.split(key, 3)

    params = init_params(k_params, STATE_DIM, ACTION_DIM)
    packed = pack_params(params, ACTION_DIM)
    state = jax.random.normal(k_state, (B, STATE_DIM), jnp.float32)
    noise = jax.random.normal(k_noise, (B, ACTION_DIM), jnp.float32)

    action, log_prob, value = actor_critic_forward(state, packed, noise)
    jax.block_until_ready((action, log_prob, value))

    # Sanity check against the pure-JAX f32 reference. Tolerances are relaxed
    # (deliberately) because the kernel runs bf16 MXU passes with f32 accumulation.
    ref_action, ref_lp, ref_value = reference_forward(state, params, noise)
    np.testing.assert_allclose(np.asarray(action), np.asarray(ref_action), rtol=3e-2, atol=3e-2)
    np.testing.assert_allclose(np.asarray(log_prob), np.asarray(ref_lp), rtol=3e-2, atol=3e-2)
    np.testing.assert_allclose(np.asarray(value), np.asarray(ref_value), rtol=3e-2, atol=3e-2)

    assert action.shape == (B, ACTION_DIM)
    assert log_prob.shape == (B,)
    assert value.shape == (B, 1)

    print("KERNEL_OK")
</pallas_src>

<mosaic_0001>
module attributes {stable_mosaic.version = 11 : i64} {
  func.func @actor_critic_kernel(%arg0: i32, %arg1: memref<8x16xf32, #tpu.memory_space<vmem>>, %arg2: memref<16x512xbf16, #tpu.memory_space<vmem>>, %arg3: memref<1x512xf32, #tpu.memory_space<vmem>>, %arg4: memref<256x256xbf16, #tpu.memory_space<vmem>>, %arg5: memref<1x256xf32, #tpu.memory_space<vmem>>, %arg6: memref<256x256xbf16, #tpu.memory_space<vmem>>, %arg7: memref<1x256xf32, #tpu.memory_space<vmem>>, %arg8: memref<256x128xbf16, #tpu.memory_space<vmem>>, %arg9: memref<1x128xf32, #tpu.memory_space<vmem>>, %arg10: memref<1x128xf32, #tpu.memory_space<vmem>>, %arg11: memref<1x128xf32, #tpu.memory_space<vmem>>, %arg12: memref<1x128xf32, #tpu.memory_space<vmem>>, %arg13: memref<1x256xf32, #tpu.memory_space<vmem>>, %arg14: memref<1x1xf32, #tpu.memory_space<vmem>>, %arg15: memref<8x4xf32, #tpu.memory_space<vmem>>, %arg16: memref<8x128xf32, #tpu.memory_space<vmem>>, %arg17: memref<8x128xf32, #tpu.memory_space<vmem>>) attributes {dimension_semantics = [#tpu.dimension_semantics<parallel>], iteration_bounds = array<i64: 1>, scalar_prefetch = 0 : i64, scratch_operands = 1 : i64, tpu.core_type = #tpu.core_type<tc>, window_params = [{transform_indices = @transform_0, window_bounds = array<i64: 8, 16>}, {pipeline_mode = #tpu.pipeline_mode<synchronous>, transform_indices = @transform_1, window_bounds = array<i64: 16, 512>}, {pipeline_mode = #tpu.pipeline_mode<synchronous>, transform_indices = @transform_2, window_bounds = array<i64: 1, 512>}, {pipeline_mode = #tpu.pipeline_mode<synchronous>, transform_indices = @transform_3, window_bounds = array<i64: 256, 256>}, {pipeline_mode = #tpu.pipeline_mode<synchronous>, transform_indices = @transform_4, window_bounds = array<i64: 1, 256>}, {pipeline_mode = #tpu.pipeline_mode<synchronous>, transform_indices = @transform_5, window_bounds = array<i64: 256, 256>}, {pipeline_mode = #tpu.pipeline_mode<synchronous>, transform_indices = @transform_6, window_bounds = array<i64: 1, 256>}, {pipeline_mode = #tpu.pipeline_mode<synchronous>, transform_indices = @transform_7, window_bounds = array<i64: 256, 128>}, {pipeline_mode = #tpu.pipeline_mode<synchronous>, transform_indices = @transform_8, window_bounds = array<i64: 1, 128>}, {pipeline_mode = #tpu.pipeline_mode<synchronous>, transform_indices = @transform_9, window_bounds = array<i64: 1, 128>}, {pipeline_mode = #tpu.pipeline_mode<synchronous>, transform_indices = @transform_10, window_bounds = array<i64: 1, 128>}, {pipeline_mode = #tpu.pipeline_mode<synchronous>, transform_indices = @transform_11, window_bounds = array<i64: 1, 128>}, {pipeline_mode = #tpu.pipeline_mode<synchronous>, transform_indices = @transform_12, window_bounds = array<i64: 1, 256>}, {pipeline_mode = #tpu.pipeline_mode<synchronous>, transform_indices = @transform_13, window_bounds = array<i64: 1, 1>}, {transform_indices = @transform_14, window_bounds = array<i64: 8, 4>}, {transform_indices = @transform_15, window_bounds = array<i64: 8, 128>}]} {
    %cst = arith.constant 0.000000e+00 : f32
    %0 = vector.broadcast %cst : f32 to vector<8x128xf32>
    %c0 = arith.constant 0 : index
    %c0_0 = arith.constant 0 : index
    %1 = vector.load %arg17[%c0, %c0_0] : memref<8x128xf32, #tpu.memory_space<vmem>>, vector<8x128xf32>
    tpu.vector_store %arg17[%c0, %c0_0], %0 {strides = array<i32>} : memref<8x128xf32, #tpu.memory_space<vmem>>, vector<8x128xf32>,
    %c0_1 = arith.constant 0 : index
    %c0_2 = arith.constant 0 : index
    %2 = vector.load %arg15[%c0_1, %c0_2] : memref<8x4xf32, #tpu.memory_space<vmem>>, vector<8x4xf32>
    %c0_3 = arith.constant 0 : index
    %c0_4 = arith.constant 0 : index
    %3 = vector.load %arg17[%c0_3, %c0_4] : memref<8x128xf32, #tpu.memory_space<vmem>>, vector<8x4xf32>
    tpu.vector_store %arg17[%c0_3, %c0_4], %2 {strides = array<i32>} : memref<8x128xf32, #tpu.memory_space<vmem>>, vector<8x4xf32>,
    %c0_5 = arith.constant 0 : index
    %c0_6 = arith.constant 0 : index
    %4 = vector.load %arg17[%c0_5, %c0_6] : memref<8x128xf32, #tpu.memory_space<vmem>>, vector<8x128xf32>
    %c0_7 = arith.constant 0 : index
    %c0_8 = arith.constant 0 : index
    %5 = vector.load %arg1[%c0_7, %c0_8] : memref<8x16xf32, #tpu.memory_space<vmem>>, vector<8x16xf32>
    %6 = arith.truncf %5 : vector<8x16xf32> to vector<8x16xbf16>
    %c0_9 = arith.constant 0 : index
    %c0_10 = arith.constant 0 : index
    %7 = vector.load %arg2[%c0_9, %c0_10] : memref<16x512xbf16, #tpu.memory_space<vmem>>, vector<16x512xbf16>
    %cst_11 = arith.constant dense<0.000000e+00> : vector<8x512xf32>
    %8 = tpu.matmul %6, %7, %cst_11 {dimension_numbers = #tpu.dot_dimension_numbers<[1], [0], [0], [1], [0, 0, 1, 1], [], []>} : vector<8x16xbf16>, vector<16x512xbf16>, vector<8x512xf32> -> vector<8x512xf32>
    %c0_12 = arith.constant 0 : index
    %c0_13 = arith.constant 0 : index
    %9 = vector.load %arg3[%c0_12, %c0_13] : memref<1x512xf32, #tpu.memory_space<vmem>>, vector<1x512xf32>
    %10 = vector.broadcast %9 : vector<1x512xf32> to vector<8x512xf32>
    %11 = arith.addf %8, %10 : vector<8x512xf32>
    %cst_14 = arith.constant 0.000000e+00 : f32
    %12 = vector.broadcast %cst_14 : f32 to vector<8x512xf32>
    %13 = arith.maximumf %11, %12 : vector<8x512xf32>
    %14 = vector.extract_strided_slice %13 {offsets = [0, 0], sizes = [8, 256], strides = [1, 1]} : vector<8x512xf32> to vector<8x256xf32>
    %15 = arith.truncf %14 : vector<8x256xf32> to vector<8x256xbf16>
    %16 = vector.extract_strided_slice %13 {offsets = [0, 256], sizes = [8, 256], strides = [1, 1]} : vector<8x512xf32> to vector<8x256xf32>
    %17 = arith.truncf %16 : vector<8x256xf32> to vector<8x256xbf16>
    %c0_15 = arith.constant 0 : index
    %c0_16 = arith.constant 0 : index
    %18 = vector.load %arg4[%c0_15, %c0_16] : memref<256x256xbf16, #tpu.memory_space<vmem>>, vector<256x256xbf16>
    %cst_17 = arith.constant dense<0.000000e+00> : vector<8x256xf32>
    %19 = tpu.matmul %15, %18, %cst_17 {dimension_numbers = #tpu.dot_dimension_numbers<[1], [0], [0], [1], [0, 0, 1, 1], [], []>} : vector<8x256xbf16>, vector<256x256xbf16>, vector<8x256xf32> -> vector<8x256xf32>
    %c0_18 = arith.constant 0 : index
    %c0_19 = arith.constant 0 : index
    %20 = vector.load %arg5[%c0_18, %c0_19] : memref<1x256xf32, #tpu.memory_space<vmem>>, vector<1x256xf32>
    %21 = vector.broadcast %20 : vector<1x256xf32> to vector<8x256xf32>
    %22 = arith.addf %19, %21 : vector<8x256xf32>
    %cst_20 = arith.constant 0.000000e+00 : f32
    %23 = vector.broadcast %cst_20 : f32 to vector<8x256xf32>
    %24 = arith.maximumf %22, %23 : vector<8x256xf32>
    %25 = arith.truncf %24 : vector<8x256xf32> to vector<8x256xbf16>
    %c0_21 = arith.constant 0 : index
    %c0_22 = arith.constant 0 : index
    %26 = vector.load %arg8[%c0_21, %c0_22] : memref<256x128xbf16, #tpu.memory_space<vmem>>, vector<256x128xbf16>
    %cst_23 = arith.constant dense<0.000000e+00> : vector<8x128xf32>
    %27 = tpu.matmul %25, %26, %cst_23 {dimension_numbers = #tpu.dot_dimension_numbers<[1], [0], [0], [1], [0, 0, 1, 1], [], []>} : vector<8x256xbf16>, vector<256x128xbf16>, vector<8x128xf32> -> vector<8x128xf32>
    %c0_24 = arith.constant 0 : index
    %c0_25 = arith.constant 0 : index
    %28 = vector.load %arg9[%c0_24, %c0_25] : memref<1x128xf32, #tpu.memory_space<vmem>>, vector<1x128xf32>
    %29 = vector.broadcast %28 : vector<1x128xf32> to vector<8x128xf32>
    %30 = arith.addf %27, %29 : vector<8x128xf32>
    %31 = math.tanh %30 : vector<8x128xf32>
    %c0_26 = arith.constant 0 : index
    %c0_27 = arith.constant 0 : index
    %32 = vector.load %arg10[%c0_26, %c0_27] : memref<1x128xf32, #tpu.memory_space<vmem>>, vector<1x128xf32>
    %33 = vector.broadcast %32 : vector<1x128xf32> to vector<8x128xf32>
    %34 = arith.mulf %33, %4 : vector<8x128xf32>
    %35 = arith.addf %31, %34 : vector<8x128xf32>
    %cst_28 = arith.constant -1.000000e+00 : f32
    %cst_29 = arith.constant 1.000000e+00 : f32
    %36 = vector.broadcast %cst_28 : f32 to vector<8x128xf32>
    %37 = arith.maximumf %36, %35 : vector<8x128xf32>
    %38 = vector.broadcast %cst_29 : f32 to vector<8x128xf32>
    %39 = arith.minimumf %38, %37 : vector<8x128xf32>
    %40 = tpu.iota {dimensions = array<i32: 1>} : vector<8x128xi32>
    %41 = arith.subf %39, %31 : vector<8x128xf32>
    %42 = arith.mulf %41, %41 : vector<8x128xf32>
    %cst_30 = arith.constant 0.000000e+00 : f32
    %43 = vector.broadcast %cst_30 : f32 to vector<8x128xf32>
    %44 = arith.subf %43, %42 : vector<8x128xf32>
    %c0_31 = arith.constant 0 : index
    %c0_32 = arith.constant 0 : index
    %45 = vector.load %arg11[%c0_31, %c0_32] : memref<1x128xf32, #tpu.memory_space<vmem>>, vector<1x128xf32>
    %46 = vector.broadcast %45 : vector<1x128xf32> to vector<8x128xf32>
    %47 = arith.mulf %44, %46 : vector<8x128xf32>
    %c0_33 = arith.constant 0 : index
    %c0_34 = arith.constant 0 : index
    %48 = vector.load %arg12[%c0_33, %c0_34] : memref<1x128xf32, #tpu.memory_space<vmem>>, vector<1x128xf32>
    %49 = vector.broadcast %48 : vector<1x128xf32> to vector<8x128xf32>
    %50 = arith.subf %47, %49 : vector<8x128xf32>
    %c4_i32 = arith.constant 4 : i32
    %51 = vector.broadcast %c4_i32 : i32 to vector<8x128xi32>
    %52 = arith.cmpi slt, %40, %51 : vector<8x128xi32>
    %cst_35 = arith.constant 0.000000e+00 : f32
    %53 = vector.broadcast %cst_35 : f32 to vector<8x128xf32>
    %54 = arith.select %52, %50, %53 : vector<8x128xi1>, vector<8x128xf32>
    %cst_36 = arith.constant dense<0.000000e+00> : vector<8xf32>
    %55 = vector.multi_reduction <add>, %54, %cst_36 [1] : vector<8x128xf32> to vector<8xf32>
    %56 = vector.shape_cast %55 : vector<8xf32> to vector<8x1xf32>
    %c0_37 = arith.constant 0 : index
    %c0_38 = arith.constant 0 : index
    %57 = vector.load %arg6[%c0_37, %c0_38] : memref<256x256xbf16, #tpu.memory_space<vmem>>, vector<256x256xbf16>
    %cst_39 = arith.constant dense<0.000000e+00> : vector<8x256xf32>
    %58 = tpu.matmul %17, %57, %cst_39 {dimension_numbers = #tpu.dot_dimension_numbers<[1], [0], [0], [1], [0, 0, 1, 1], [], []>} : vector<8x256xbf16>, vector<256x256xbf16>, vector<8x256xf32> -> vector<8x256xf32>
    %c0_40 = arith.constant 0 : index
    %c0_41 = arith.constant 0 : index
    %59 = vector.load %arg7[%c0_40, %c0_41] : memref<1x256xf32, #tpu.memory_space<vmem>>, vector<1x256xf32>
    %60 = vector.broadcast %59 : vector<1x256xf32> to vector<8x256xf32>
    %61 = arith.addf %58, %60 : vector<8x256xf32>
    %cst_42 = arith.constant 0.000000e+00 : f32
    %62 = vector.broadcast %cst_42 : f32 to vector<8x256xf32>
    %63 = arith.maximumf %61, %62 : vector<8x256xf32>
    %c0_43 = arith.constant 0 : index
    %c0_44 = arith.constant 0 : index
    %64 = vector.load %arg13[%c0_43, %c0_44] : memref<1x256xf32, #tpu.memory_space<vmem>>, vector<1x256xf32>
    %65 = vector.broadcast %64 : vector<1x256xf32> to vector<8x256xf32>
    %66 = arith.mulf %63, %65 : vector<8x256xf32>
    %cst_45 = arith.constant dense<0.000000e+00> : vector<8xf32>
    %67 = vector.multi_reduction <add>, %66, %cst_45 [1] : vector<8x256xf32> to vector<8xf32>
    %68 = vector.shape_cast %67 : vector<8xf32> to vector<8x1xf32>
    %c0_46 = arith.constant 0 : index
    %c0_47 = arith.constant 0 : index
    %69 = vector.load %arg14[%c0_46, %c0_47] : memref<1x1xf32, #tpu.memory_space<vmem>>, vector<1x1xf32>
    %70 = vector.broadcast %69 : vector<1x1xf32> to vector<8x1xf32>
    %71 = arith.addf %68, %70 : vector<8x1xf32>
    %c126_i32 = arith.constant 126 : i32
    %72 = vector.broadcast %c126_i32 : i32 to vector<8x128xi32>
    %73 = arith.cmpi eq, %40, %72 : vector<8x128xi32>
    %74 = vector.shape_cast %56 : vector<8x1xf32> to vector<8x1xf32>
    %75 = vector.broadcast %74 : vector<8x1xf32> to vector<8x128xf32>
    %76 = arith.select %73, %75, %39 : vector<8x128xi1>, vector<8x128xf32>
    %c127_i32 = arith.constant 127 : i32
    %77 = vector.broadcast %c127_i32 : i32 to vector<8x128xi32>
    %78 = arith.cmpi eq, %40, %77 : vector<8x128xi32>
    %79 = vector.shape_cast %71 : vector<8x1xf32> to vector<8x1xf32>
    %80 = vector.broadcast %79 : vector<8x1xf32> to vector<8x128xf32>
    %81 = arith.select %78, %80, %76 : vector<8x128xi1>, vector<8x128xf32>
    %c0_48 = arith.constant 0 : index
    %c0_49 = arith.constant 0 : index
    %82 = vector.load %arg16[%c0_48, %c0_49] : memref<8x128xf32, #tpu.memory_space<vmem>>, vector<8x128xf32>
    tpu.vector_store %arg16[%c0_48, %c0_49], %81 {strides = array<i32>} : memref<8x128xf32, #tpu.memory_space<vmem>>, vector<8x128xf32>,
    return
  }
  func.func @transform_0(%arg0: i32) -> (i32, i32) {
    %c0_i32 = arith.constant 0 : i32
    %c0_i32_0 = arith.constant 0 : i32
    return %arg0, %c0_i32 : i32, i32
  }
  func.func @transform_1(%arg0: i32) -> (i32, i32) {
    %c0_i32 = arith.constant 0 : i32
    %c0_i32_0 = arith.constant 0 : i32
    %c0_i32_1 = arith.constant 0 : i32
    return %c0_i32, %c0_i32_0 : i32, i32
  }
  func.func @transform_2(%arg0: i32) -> (i32, i32) {
    %c0_i32 = arith.constant 0 : i32
    %c0_i32_0 = arith.constant 0 : i32
    %c0_i32_1 = arith.constant 0 : i32
    return %c0_i32, %c0_i32_0 : i32, i32
  }
  func.func @transform_3(%arg0: i32) -> (i32, i32) {
    %c0_i32 = arith.constant 0 : i32
    %c0_i32_0 = arith.constant 0 : i32
    %c0_i32_1 = arith.constant 0 : i32
    return %c0_i32, %c0_i32_0 : i32, i32
  }
  func.func @transform_4(%arg0: i32) -> (i32, i32) {
    %c0_i32 = arith.constant 0 : i32
    %c0_i32_0 = arith.constant 0 : i32
    %c0_i32_1 = arith.constant 0 : i32
    return %c0_i32, %c0_i32_0 : i32, i32
  }
  func.func @transform_5(%arg0: i32) -> (i32, i32) {
    %c0_i32 = arith.constant 0 : i32
    %c0_i32_0 = arith.constant 0 : i32
    %c0_i32_1 = arith.constant 0 : i32
    return %c0_i32, %c0_i32_0 : i32, i32
  }
  func.func @transform_6(%arg0: i32) -> (i32, i32) {
    %c0_i32 = arith.constant 0 : i32
    %c0_i32_0 = arith.constant 0 : i32
    %c0_i32_1 = arith.constant 0 : i32
    return %c0_i32, %c0_i32_0 : i32, i32
  }
  func.func @transform_7(%arg0: i32) -> (i32, i32) {
    %c0_i32 = arith.constant 0 : i32
    %c0_i32_0 = arith.constant 0 : i32
    %c0_i32_1 = arith.constant 0 : i32
    return %c0_i32, %c0_i32_0 : i32, i32
  }
  func.func @transform_8(%arg0: i32) -> (i32, i32) {
    %c0_i32 = arith.constant 0 : i32
    %c0_i32_0 = arith.constant 0 : i32
    %c0_i32_1 = arith.constant 0 : i32
    return %c0_i32, %c0_i32_0 : i32, i32
  }
  func.func @transform_9(%arg0: i32) -> (i32, i32) {
    %c0_i32 = arith.constant 0 : i32
    %c0_i32_0 = arith.constant 0 : i32
    %c0_i32_1 = arith.constant 0 : i32
    return %c0_i32, %c0_i32_0 : i32, i32
  }
  func.func @transform_10(%arg0: i32) -> (i32, i32) {
    %c0_i32 = arith.constant 0 : i32
    %c0_i32_0 = arith.constant 0 : i32
    %c0_i32_1 = arith.constant 0 : i32
    return %c0_i32, %c0_i32_0 : i32, i32
  }
  func.func @transform_11(%arg0: i32) -> (i32, i32) {
    %c0_i32 = arith.constant 0 : i32
    %c0_i32_0 = arith.constant 0 : i32
    %c0_i32_1 = arith.constant 0 : i32
    return %c0_i32, %c0_i32_0 : i32, i32
  }
  func.func @transform_12(%arg0: i32) -> (i32, i32) {
    %c0_i32 = arith.constant 0 : i32
    %c0_i32_0 = arith.constant 0 : i32
    %c0_i32_1 = arith.constant 0 : i32
    return %c0_i32, %c0_i32_0 : i32, i32
  }
  func.func @transform_13(%arg0: i32) -> (i32, i32) {
    %c0_i32 = arith.constant 0 : i32
    %c0_i32_0 = arith.constant 0 : i32
    %c0_i32_1 = arith.constant 0 : i32
    return %c0_i32, %c0_i32_0 : i32, i32
  }
  func.func @transform_14(%arg0: i32) -> (i32, i32) {
    %c0_i32 = arith.constant 0 : i32
    %c0_i32_0 = arith.constant 0 : i32
    return %arg0, %c0_i32 : i32, i32
  }
  func.func @transform_15(%arg0: i32) -> (i32, i32) {
    %c0_i32 = arith.constant 0 : i32
    %c0_i32_0 = arith.constant 0 : i32
    return %arg0, %c0_i32 : i32, i32
  }
}

</mosaic_0001>

<bundles_post_ra>
// kernel: tpu_custom_call.1
= control target key start
LH: loop header
LB: loop body
LE: loop exit
PB: predicated region body
PF: predicated region fallthrough
CT: control target
= control target key end

     0   :  { %s1611_s0 = inlined_call_operand.vmem [shape: f32[8,16], index: 0, kind: input, shape index: {}]   ;;  %s1612_s1 = inlined_call_operand.hbm [shape: bf16[16,512], index: 1, kind: input, shape index: {}]   ;;  %s1613_s2 = inlined_call_operand.vmem [shape: f32[1,512], index: 2, kind: input, shape index: {}]   ;;  %s1614_s3 = inlined_call_operand.hbm [shape: bf16[256,256], index: 3, kind: input, shape index: {}]   ;;  %s1615_s4 = inlined_call_operand.vmem [shape: f32[1,256], index: 4, kind: input, shape index: {}]   ;;  %s1616_s5 = inlined_call_operand.hbm [shape: bf16[256,256], index: 5, kind: input, shape index: {}]   ;;  %s1617_s6 = inlined_call_operand.vmem [shape: f32[1,256], index: 6, kind: input, shape index: {}]   ;;  %s1618_s7 = inlined_call_operand.hbm [shape: bf16[256,128], index: 7, kind: input, shape index: {}]   ;;  %s1619_s8 = inlined_call_operand.vmem [shape: f32[1,128], index: 8, kind: input, shape index: {}]   ;;  %s1620_s9 = inlined_call_operand.vmem [shape: f32[1,128], index: 9, kind: input, shape index: {}]   ;;  %s1621_s10 = inlined_call_operand.vmem [shape: f32[1,128], index: 10, kind: input, shape index: {}]   ;;  %s1622_s11 = inlined_call_operand.vmem [shape: f32[1,128], index: 11, kind: input, shape index: {}]   ;;  %s1623_s12 = inlined_call_operand.vmem [shape: f32[1,256], index: 12, kind: input, shape index: {}]   ;;  %s1624_s13 = inlined_call_operand.<no memory space> [shape: f32[1,1], index: 13, kind: input, shape index: {}]   ;;  %s1625_s14 = inlined_call_operand.vmem [shape: f32[8,4], index: 14, kind: input, shape index: {}]   ;;  %s1626_s15 = inlined_call_operand.hbm [shape: f32[8,128], index: 15, kind: output, shape index: {}]  }
   0x1   :  { %v20_v0 = vstv %s1624_s13 }
   0x2   :  { %21 = vst [vmem:[#allocation3] sm:$0x1] %v20_v0 }
   0x3   :  { %22 = vsyncpa [#allocation5], 0 }
   0x4   :  { %23 = vsyncpa [#allocation8], 0 }
   0x5   :  { %24 = vsyncpa [#allocation11], 0 }
   0x6   :  { %25 = vsyncpa [#allocation6], 0  ;;  %s1383_s20 = smov [#allocation7]   ;;  %s1265_s24 = scalar_lea.hbm %s1614_s3, 4096 }
   0x7   :  { %s47_s21 = sshll.u32 %s1383_s20, 4  ;;  %p1266_p0 = scmp.ne.s32.totalorder %s1614_s3, %s1265_s24  ;;  %s48_s21 = int_to_ptr.vmem [resolvable:$true] %s47_s21 }
   0x8   :  { %p1269_p1 = scmp.lt.u32.totalorder %s1265_s24, %s1614_s3 }
   0xa   :  { %p1271_p2 = pnand %p1269_p1, %p1266_p0 }
   0xc   :  { %1274 = shalt.err (!%p1271_p2)
}
   0xd   :  { %s1275_s13 = scalar_lea.vmem %s48_s21, 4096  ;;  %p1280_p4 = scmp.lt.s32.totalorder %s48_s21, %s48_s21 }
   0xe   :  { %p1276_p3 = scmp.ne.s32.totalorder %s48_s21, %s1275_s13  ;;  %p1281_p5 = scmp.lt.s32.totalorder %s1275_s13, %s1275_s13 }
  0x10   :  { %p1282_p6 = por %p1281_p5, %p1280_p4 }
  0x12   :  { %p1283_p7 = pnand %p1282_p6, %p1276_p3 }
  0x14   :  { %1286 = shalt.err (!%p1283_p7)
}
  0x15   :  { %s1627_s29 = smov 128   ;;  %s1385_s30 = smov 8  }
  0x16   :  { %53 = dma.hbm_to_vmem [thread:$0]  %s1614_s3, 4096, %s48_s21, [#allocation8], %s1627_s29, %s1627_s29, %s1385_s30  }
  0x17   :  { %s1386_s18 = smov [#allocation4]   ;;  %s1287_s23 = scalar_lea.hbm %s1612_s1, 512 }
  0x18   :  { %s33_s19 = sshll.u32 %s1386_s18, 4  ;;  %p1288_p8 = scmp.ne.s32.totalorder %s1612_s1, %s1287_s23  ;;  %s34_s19 = int_to_ptr.vmem [resolvable:$true] %s33_s19 }
  0x19   :  { %p1291_p9 = scmp.lt.u32.totalorder %s1287_s23, %s1612_s1 }
  0x1b   :  { %p1293_p10 = pnand %p1291_p9, %p1288_p8 }
  0x1d   :  { %1296 = shalt.err (!%p1293_p10)
}
  0x1e   :  { %s1297_s28 = scalar_lea.vmem %s34_s19, 512  ;;  %p1302_p12 = scmp.lt.s32.totalorder %s34_s19, %s34_s19 }
  0x1f   :  { %p1298_p11 = scmp.ne.s32.totalorder %s34_s19, %s1297_s28  ;;  %p1303_p13 = scmp.lt.s32.totalorder %s1297_s28, %s1297_s28 }
  0x21   :  { %p1304_p0 = por %p1303_p13, %p1302_p12 }
  0x23   :  { %p1305_p1 = pnand %p1304_p0, %p1298_p11 }
  0x25   :  { %1308 = shalt.err (!%p1305_p1)
}
  0x26   :  { %s1387_s3 = smov 256   ;;  %s1388_s21 = smov 16  }
  0x27   :  { %39 = dma.hbm_to_vmem [thread:$0]  %s1612_s1, 512, %s34_s19, [#allocation5], %s1387_s3, %s1387_s3, %s1388_s21  }
  0x28   :  { %s1389_s17 = smov [#allocation9]   ;;  %s1390_s20 = smov [#allocation10]  }
  0x29   :  { %s61_s18 = sshll.u32 %s1389_s17, 4  ;;  %s75_s22 = sshll.u32 %s1390_s20, 4  ;;  %s62_s18 = int_to_ptr.vmem [resolvable:$true] %s61_s18  ;;  %s1506_s22 = int_to_ptr.vmem [resolvable:$true] %s75_s22 }
  0x2a   :  { %s1309_s25 = scalar_lea.hbm %s1616_s5, 4096 }
  0x2b   :  { %p1310_p2 = scmp.ne.s32.totalorder %s1616_s5, %s1309_s25  ;;  %p1313_p3 = scmp.lt.u32.totalorder %s1309_s25, %s1616_s5 }
  0x2d   :  { %p1315_p4 = pnand %p1313_p3, %p1310_p2 }
  0x2f   :  { %1318 = shalt.err (!%p1315_p4)
}
  0x30   :  { %s1319_s1 = scalar_lea.vmem %s62_s18, 4096  ;;  %p1324_p6 = scmp.lt.s32.totalorder %s62_s18, %s62_s18 }
  0x31   :  { %p1320_p5 = scmp.ne.s32.totalorder %s62_s18, %s1319_s1  ;;  %p1325_p7 = scmp.lt.s32.totalorder %s1319_s1, %s1319_s1 }
  0x33   :  { %p1326_p8 = por %p1325_p7, %p1324_p6 }
  0x35   :  { %p1327_p9 = pnand %p1326_p8, %p1320_p5 }
  0x37   :  { %1330 = shalt.err (!%p1327_p9)
}
  0x38   :  { %s1628_s19 = smov 128   ;;  %s1331_s29 = scalar_lea.hbm %s1618_s7, 2048 }
  0x39   :  { %67 = dma.hbm_to_vmem [thread:$0]  %s1616_s5, 4096, %s62_s18, [#allocation8], %s1628_s19, %s1628_s19, %s1385_s30  }
  0x3a   :  { %p1332_p10 = scmp.ne.s32.totalorder %s1618_s7, %s1331_s29  ;;  %p1335_p11 = scmp.lt.u32.totalorder %s1331_s29, %s1618_s7 }
  0x3c   :  { %p1337_p12 = pnand %p1335_p11, %p1332_p10 }
  0x3e   :  { %1340 = shalt.err (!%p1337_p12)
}
  0x3f   :  { %s1341_s25 = scalar_lea.vmem %s1506_s22, 2048  ;;  %p1346_p0 = scmp.lt.s32.totalorder %s1506_s22, %s1506_s22 }
  0x40   :  { %p1342_p13 = scmp.ne.s32.totalorder %s1506_s22, %s1341_s25  ;;  %p1347_p1 = scmp.lt.s32.totalorder %s1341_s25, %s1341_s25 }
  0x42   :  { %p1348_p2 = por %p1347_p1, %p1346_p0 }
  0x44   :  { %p1349_p3 = pnand %p1348_p2, %p1342_p13 }
  0x46   :  { %1352 = shalt.err (!%p1349_p3)
}
  0x47   :  { %s1391_s5 = smov 64   ;;  %s1392_s30 = smov 4  }
  0x48   :  { %81 = dma.hbm_to_vmem [thread:$0]  %s1618_s7, 2048, %s1506_s22, [#allocation11], %s1391_s5, %s1391_s5, %s1392_s30  }
  0x49   :  { %1375 = dma.done.wait [#allocation5], 512  }
  0x4a   :  { %1376 = vsyncadd [#allocation5], 4294966784 }
  0x4b   :  { %1377 = dma.done.wait [#allocation8], 8192  }
  0x4c   :  { %1378 = vsyncadd [#allocation8], 4294959104 }
  0x4d   :  { %1379 = dma.done.wait [#allocation11], 2048  }
  0x4e   :  { %1380 = vsyncadd [#allocation11], 4294965248  ;;  %v1393_v1 = vmov 0   ;;  %v1145_v2 = vld [vmem:[#allocation4 + $0x4] ss:$16 sps:$4 sm:$0xff]   ;;  %vm162_vm0 = vcmask 130048   ;;  %v122_v52 = vlaneseq }
  0x4f   :  { %198 = vmatprep.mubr.bf16.mxu0 %v1393_v1  ;;  %1143 = vset.pattern.permute.xlu1 %v1393_v1  ;;  %v1147_v3 = vld [vmem:[#allocation4] ss:$16 sps:$4 sm:$0xff]   ;;  %v114_v4 = vld [vmem:[%s1611_s0] sm:$0xff]  ;;  %v1153_v8 = vld [vmem:[#allocation7 + $0x4] ss:$8 sps:$4 sm:$0xff]   ;;  %vm111_vm1 = vcmask 31744  }
  0x50   :  { %1144 = vset.pattern.permute.xlu0 %v1393_v1  ;;  %166 = vmatprep.subr.bf16.mxu0 %v1145_v2  ;;  %v115_v5 = vpack.c.bf16 %v114_v4, %v114_v4  ;;  %v1150_v6 = vld [vmem:[#allocation4 + $0xc] ss:$16 sps:$4 sm:$0xff]   ;;  %v1148_v7 = vld [vmem:[#allocation4 + $0x8] ss:$16 sps:$4 sm:$0xff]   ;;  %v1199_v40 = vld [vmem:[#allocation10 + $0x40] sm:$0xff]   ;;  %v1544_v53 = vshrl.u32 %v122_v52, 7 }
  0x51   :  { %167 = vmatpush1.bf16.msra.mxu0 %v1147_v3  ;;  %v1151_v9 = vld [vmem:[#allocation7] ss:$8 sps:$4 sm:$0xff]   ;;  %v1156_v10 = vld [vmem:[#allocation7 + $0x14] ss:$8 sps:$4 sm:$0xff]   ;;  %v1154_v11 = vld [vmem:[#allocation7 + $0x10] ss:$8 sps:$4 sm:$0xff]   ;;  %1108 = vmatprep.subr.bf16.mxu1 %v1199_v40 }
  0x52   :  { %207 = vmatprep.subr.bf16.mxu0 %v1150_v6  ;;  %v1159_v12 = vld [vmem:[#allocation7 + $0x24] ss:$8 sps:$4 sm:$0xff]   ;;  %v1157_v13 = vld [vmem:[#allocation7 + $0x20] ss:$8 sps:$4 sm:$0xff]   ;;  %v1162_v14 = vld [vmem:[#allocation7 + $0x34] ss:$8 sps:$4 sm:$0xff]  }
  0x53   :  { %v1160_v15 = vld [vmem:[#allocation7 + $0x30] ss:$8 sps:$4 sm:$0xff]   ;;  %v1165_v16 = vld [vmem:[#allocation7 + $0x44] ss:$8 sps:$4 sm:$0xff]   ;;  %v1163_v17 = vld [vmem:[#allocation7 + $0x40] ss:$8 sps:$4 sm:$0xff]  }
  0x54   :  { %1020 = vmatmul.mubr.msk.bf16.vlgmr.msra.gmra.mrb[0].mxu0 %vm162_vm0, %v115_v5  ;;  %v1168_v18 = vld [vmem:[#allocation7 + $0x54] ss:$8 sps:$4 sm:$0xff]   ;;  %v1166_v19 = vld [vmem:[#allocation7 + $0x50] ss:$8 sps:$4 sm:$0xff]   ;;  %v1171_v20 = vld [vmem:[#allocation7 + $0x64] ss:$8 sps:$4 sm:$0xff]  }
  0x55   :  { %208 = vmatpush1.bf16.msra.mxu0 %v1148_v7  ;;  %239 = vmatprep.mubr.bf16.mxu0 %v1393_v1  ;;  %v1169_v21 = vld [vmem:[#allocation7 + $0x60] ss:$8 sps:$4 sm:$0xff]   ;;  %v1174_v22 = vld [vmem:[#allocation7 + $0x74] ss:$8 sps:$4 sm:$0xff]   ;;  %v1172_v23 = vld [vmem:[#allocation7 + $0x70] ss:$8 sps:$4 sm:$0xff]  }
  0x56   :  { %460 = vmatprep.subr.bf16.mxu0 %v1153_v8  ;;  %v1177_v24 = vld [vmem:[#allocation7 + $0x84] ss:$8 sps:$4 sm:$0xff]   ;;  %v1175_v25 = vld [vmem:[#allocation7 + $0x80] ss:$8 sps:$4 sm:$0xff]   ;;  %v1180_v26 = vld [vmem:[#allocation7 + $0x94] ss:$8 sps:$4 sm:$0xff]  }
  0x57   :  { %v1178_v27 = vld [vmem:[#allocation7 + $0x90] ss:$8 sps:$4 sm:$0xff]   ;;  %v1183_v28 = vld [vmem:[#allocation7 + $0xa4] ss:$8 sps:$4 sm:$0xff]   ;;  %v1181_v29 = vld [vmem:[#allocation7 + $0xa0] ss:$8 sps:$4 sm:$0xff]  }
  0x58   :  { %v1186_v30 = vld [vmem:[#allocation7 + $0xb4] ss:$8 sps:$4 sm:$0xff]   ;;  %v1184_v31 = vld [vmem:[#allocation7 + $0xb0] ss:$8 sps:$4 sm:$0xff]   ;;  %v1189_v32 = vld [vmem:[#allocation7 + $0xc4] ss:$8 sps:$4 sm:$0xff]  }
  0x59   :  { %v1187_v33 = vld [vmem:[#allocation7 + $0xc0] ss:$8 sps:$4 sm:$0xff]   ;;  %v1192_v34 = vld [vmem:[#allocation7 + $0xd4] ss:$8 sps:$4 sm:$0xff]   ;;  %v1190_v35 = vld [vmem:[#allocation7 + $0xd0] ss:$8 sps:$4 sm:$0xff]  }
  0x5a   :  { %v1195_v36 = vld [vmem:[#allocation7 + $0xe4] ss:$8 sps:$4 sm:$0xff]   ;;  %v1193_v37 = vld [vmem:[#allocation7 + $0xe0] ss:$8 sps:$4 sm:$0xff]   ;;  %v1198_v38 = vld [vmem:[#allocation7 + $0xf4] ss:$8 sps:$4 sm:$0xff]  }
  0x5b   :  { %v1196_v39 = vld [vmem:[#allocation7 + $0xf0] ss:$8 sps:$4 sm:$0xff]   ;;  %v1200_v41 = vld [vmem:[#allocation10] sm:$0xff]   ;;  %v1201_v42 = vld [vmem:[#allocation10 + $0x48] sm:$0xff]   ;;  %v1547_v54 = vsub.s32 0, %v1544_v53  ;;  %v1555_v56 = vsub.s32 1, %v1544_v53 }
  0x5c   :  { %1021 = vmatmul.mubr.msk.bf16.vlgmr.msra.gmra.mrb[4].mxu0 %vm162_vm0, %v115_v5  ;;  %1109 = vmatpush3.bf16.msra.mxu1 %v1200_v41  ;;  %v1202_v43 = vld [vmem:[#allocation10 + $0x8] sm:$0xff]   ;;  %v1203_v44 = vld [vmem:[#allocation10 + $0x50] sm:$0xff]   ;;  %v1205_v46 = vld [vmem:[#allocation10 + $0x58] sm:$0xff]  }
  0x5d   :  { %461 = vmatpush1.bf16.msra.mxu0 %v1151_v9  ;;  %1110 = vmatprep.subr.bf16.mxu1 %v1201_v42  ;;  %v1204_v45 = vld [vmem:[#allocation10 + $0x10] sm:$0xff]   ;;  %v1206_v47 = vld [vmem:[#allocation10 + $0x18] sm:$0xff]   ;;  %v1207_v48 = vld [vmem:[#allocation10 + $0x60] sm:$0xff]  }
  0x5e   :  { %462 = vmatprep.subr.bf16.mxu0 %v1156_v10  ;;  %v1208_v49 = vld [vmem:[#allocation10 + $0x20] sm:$0xff]   ;;  %v1209_v50 = vld [vmem:[#allocation10 + $0x68] sm:$0xff]   ;;  %v1552_v55 = vld [vmem:[%s1613_s2] sm:$0xf] }
  0x5f   :  { %v1210_v51 = vld [vmem:[#allocation10 + $0x28] sm:$0xff]   ;;  %v125_v57 = vrot.slane %v1552_v55, %v1547_v54  ;;  %v129_v58 = vrot.slane %v1552_v55, %v1555_v56  ;;  %v1211_v9 = vld [vmem:[#allocation10 + $0x70] sm:$0xff]  }
  0x60   :  { %1111 = vmatpush3.bf16.msra.mxu1 %v1202_v43  ;;  %v1212_v10 = vld [vmem:[#allocation10 + $0x30] sm:$0xff]   ;;  %v1227_v40 = vld [vmem:[#allocation9 + $0x40] ss:$8 sps:$4 sm:$0xff]   ;;  %v1235_v43 = vld [vmem:[#allocation9 + $0x64] ss:$8 sps:$4 sm:$0xff]  }
  0x61   :  { %463 = vmatpush1.bf16.msra.mxu0 %v1154_v11  ;;  %1112 = vmatprep.subr.bf16.mxu1 %v1203_v44  ;;  %v1213_v11 = vld [vmem:[#allocation10 + $0x78] sm:$0xff]   ;;  %v1233_v44 = vld [vmem:[#allocation9 + $0x60] ss:$8 sps:$4 sm:$0xff]  }
  0x62   :  { %464 = vmatprep.subr.bf16.mxu0 %v1159_v12  ;;  %v1214_v12 = vld [vmem:[#allocation10 + $0x38] sm:$0xff]  }
  0x63   :  { %v1232_v41 = vld [vmem:[#allocation9 + $0x54] ss:$8 sps:$4 sm:$0xff]   ;;  %v1230_v42 = vld [vmem:[#allocation9 + $0x50] ss:$8 sps:$4 sm:$0xff]  }
  0x64   :  { %1113 = vmatpush3.bf16.msra.mxu1 %v1204_v45  ;;  %v1238_v45 = vld [vmem:[#allocation9 + $0x74] ss:$8 sps:$4 sm:$0xff]  }
  0x65   :  { %465 = vmatpush1.bf16.msra.mxu0 %v1157_v13  ;;  %1114 = vmatprep.subr.bf16.mxu1 %v1205_v46  ;;  %v1217_v13 = vld [vmem:[#allocation9 + $0x4] ss:$8 sps:$4 sm:$0xff]   ;;  %v1236_v46 = vld [vmem:[#allocation9 + $0x70] ss:$8 sps:$4 sm:$0xff]  }
  0x66   :  { %466 = vmatprep.subr.bf16.mxu0 %v1162_v14  ;;  %v136_v14 = vsub.s32 3, %v1544_v53 }
  0x68   :  { %1115 = vmatpush3.bf16.msra.mxu1 %v1206_v47  ;;  %v1241_v47 = vld [vmem:[#allocation9 + $0x84] ss:$8 sps:$4 sm:$0xff]  }
  0x69   :  { %467 = vmatpush1.bf16.msra.mxu0 %v1160_v15  ;;  %1116 = vmatprep.subr.bf16.mxu1 %v1207_v48  ;;  %v288_v15 = vld [vmem:[%s1615_s4] sm:$0x3]  ;;  %v1239_v48 = vld [vmem:[#allocation9 + $0x80] ss:$8 sps:$4 sm:$0xff]  }
  0x6a   :  { %468 = vmatprep.subr.bf16.mxu0 %v1165_v16  ;;  %v137_v16 = vrot.slane %v1552_v55, %v136_v14  ;;  %v1054_v14 = vld [vmem:[%s1619_s8] ss:$0 sm:$0xff] }
  0x6c   :  { %1117 = vmatpush3.bf16.msra.mxu1 %v1208_v49  ;;  %v1244_v49 = vld [vmem:[#allocation9 + $0x94] ss:$8 sps:$4 sm:$0xff]  }
  0x6d   :  { %469 = vmatpush1.bf16.msra.mxu0 %v1163_v17  ;;  %1118 = vmatprep.subr.bf16.mxu1 %v1209_v50  ;;  %v293_v17 = vrot.slane %v288_v15, %v1547_v54  ;;  %v1242_v50 = vld [vmem:[#allocation9 + $0x90] ss:$8 sps:$4 sm:$0xff]  }
  0x6e   :  { %470 = vmatprep.subr.bf16.mxu0 %v1168_v18  ;;  %v297_v18 = vrot.slane %v288_v15, %v1555_v56 }
  0x70   :  { %1119 = vmatpush3.bf16.msra.mxu1 %v1210_v51  ;;  %v1247_v51 = vld [vmem:[#allocation9 + $0xa4] ss:$8 sps:$4 sm:$0xff]  }
  0x71   :  { %471 = vmatpush1.bf16.msra.mxu0 %v1166_v19  ;;  %1120 = vmatprep.subr.bf16.mxu1 %v1211_v9  ;;  %v1394_v9 = vmov 0.0  }
  0x72   :  { %472 = vmatprep.subr.bf16.mxu0 %v1171_v20  ;;  %109 = vst [vmem:[#allocation2] sm:$0xff] %v1394_v9 }
  0x74   :  { %1121 = vmatpush3.bf16.msra.mxu1 %v1212_v10 }
  0x75   :  { %473 = vmatpush1.bf16.msra.mxu0 %v1169_v21  ;;  %1122 = vmatprep.subr.bf16.mxu1 %v1213_v11 }
  0x76   :  { %474 = vmatprep.subr.bf16.mxu0 %v1174_v22 }
  0x78   :  { %1123 = vmatpush3.bf16.msra.mxu1 %v1214_v12 }
  0x79   :  { %475 = vmatpush1.bf16.msra.mxu0 %v1172_v23  ;;  %921 = vmatprep.subr.bf16.mxu1 %v1217_v13 }
  0x7a   :  { %476 = vmatprep.subr.bf16.mxu0 %v1177_v24 }
  0x7d   :  { %477 = vmatpush1.bf16.msra.mxu0 %v1175_v25 }
  0x7e   :  { %478 = vmatprep.subr.bf16.mxu0 %v1180_v26 }
  0x81   :  { %479 = vmatpush1.bf16.msra.mxu0 %v1178_v27 }
  0x82   :  { %480 = vmatprep.subr.bf16.mxu0 %v1183_v28 }
  0x85   :  { %481 = vmatpush1.bf16.msra.mxu0 %v1181_v29 }
  0x86   :  { %482 = vmatprep.subr.bf16.mxu0 %v1186_v30  ;;  %v1215_v30 = vld [vmem:[#allocation9] ss:$8 sps:$4 sm:$0xff]  }
  0x89   :  { %483 = vmatpush1.bf16.msra.mxu0 %v1184_v31 }
  0x8a   :  { %484 = vmatprep.subr.bf16.mxu0 %v1189_v32  ;;  %v1220_v32 = vld [vmem:[#allocation9 + $0x14] ss:$8 sps:$4 sm:$0xff]  }
  0x8d   :  { %485 = vmatpush1.bf16.msra.mxu0 %v1187_v33 }
  0x8e   :  { %486 = vmatprep.subr.bf16.mxu0 %v1192_v34  ;;  %v1218_v34 = vld [vmem:[#allocation9 + $0x10] ss:$8 sps:$4 sm:$0xff]  }
  0x91   :  { %487 = vmatpush1.bf16.msra.mxu0 %v1190_v35  ;;  %v1223_v35 = vld [vmem:[#allocation9 + $0x24] ss:$8 sps:$4 sm:$0xff]  }
  0x92   :  { %488 = vmatprep.subr.bf16.mxu0 %v1195_v36  ;;  %v1221_v36 = vld [vmem:[#allocation9 + $0x20] ss:$8 sps:$4 sm:$0xff]  }
  0x95   :  { %489 = vmatpush1.bf16.msra.mxu0 %v1193_v37  ;;  %v1226_v37 = vld [vmem:[#allocation9 + $0x34] ss:$8 sps:$4 sm:$0xff]  }
  0x96   :  { %490 = vmatprep.subr.bf16.mxu0 %v1198_v38  ;;  %v1224_v38 = vld [vmem:[#allocation9 + $0x30] ss:$8 sps:$4 sm:$0xff]  }
  0x99   :  { %491 = vmatpush1.bf16.msra.mxu0 %v1196_v39  ;;  %v1229_v39 = vld [vmem:[#allocation9 + $0x44] ss:$8 sps:$4 sm:$0xff]  }
 0x127   :  { %v200_v59 = vpop.f32.mrb[0].mxu0 }
 0x128   :  { %v201_v60 = vadd.f32 %v200_v59, %v125_v57  ;;  %v202_v61 = vpop.f32.mrb[1].mxu0  ;;  %v1245_v57 = vld [vmem:[#allocation9 + $0xa0] ss:$8 sps:$4 sm:$0xff]   ;;  %v1248_v59 = vld [vmem:[#allocation9 + $0xb0] ss:$8 sps:$4 sm:$0xff]  }
 0x129   :  { %v203_v62 = vadd.f32 %v202_v61, %v129_v58  ;;  %v204_v63 = vpop.f32.mrb[2].mxu0  ;;  %v1250_v58 = vld [vmem:[#allocation9 + $0xb4] ss:$8 sps:$4 sm:$0xff]   ;;  %v1251_v61 = vld [vmem:[#allocation9 + $0xc0] ss:$8 sps:$4 sm:$0xff]  }
 0x12a   :  { %v248_v0 = vmax.f32 %v201_v60, 0.0  ;;  %v205_v1 = vpop.f32.mrb[3].mxu0  ;;  %v1253_v60 = vld [vmem:[#allocation9 + $0xc4] ss:$8 sps:$4 sm:$0xff]   ;;  %v1256_v63 = vld [vmem:[#allocation9 + $0xd4] ss:$8 sps:$4 sm:$0xff]  }
 0x12b   :  { %v249_v2 = vmax.f32 %v203_v62, 0.0  ;;  %v132_v62 = vsub.s32 2, %v1544_v53 }
 0x12c   :  { %v252_v4 = vpack.c.bf16 %v248_v0, %v248_v0  ;;  %v1254_v0 = vld [vmem:[#allocation9 + $0xd0] ss:$8 sps:$4 sm:$0xff]  }
 0x12d   :  { %v253_v3 = vpack.c.bf16 %v249_v2, %v249_v2  ;;  %v133_v1 = vrot.slane %v1552_v55, %v132_v62  ;;  %v1259_v2 = vld [vmem:[#allocation9 + $0xe4] ss:$8 sps:$4 sm:$0xff]   ;;  %v110_v55 = vld [vmem:[%s1625_s14] sm:$0xff] }
 0x12e   :  { %112 = vst.msk [vmem:[#allocation2] sm:$0xff] %vm111_vm1, %v110_v55 }
 0x12f   :  { %492 = vmatprep.mubr.bf16.mxu0 %v253_v3  ;;  %v1561_v5 = vpop.f32.mrb[4].mxu0  ;;  %v1257_v3 = vld [vmem:[#allocation9 + $0xe0] ss:$8 sps:$4 sm:$0xff]  }
 0x130   :  { %493 = vmatmul.mubr.bf16.vlgmr.msra.gmra.mrb[8].mxu0 %v252_v4  ;;  %v243_v6 = vpop.f32.mrb[5].mxu0  ;;  %v242_v4 = vadd.f32 %v1561_v5, %v133_v1 }
 0x131   :  { %v245_v7 = vpop.f32.mrb[6].mxu0  ;;  %v244_v19 = vadd.f32 %v243_v6, %v137_v16  ;;  %v1262_v6 = vld [vmem:[#allocation9 + $0xf4] ss:$8 sps:$4 sm:$0xff]  }
 0x132   :  { %v246_v8 = vpop.f32.mrb[7].mxu0  ;;  %v1260_v7 = vld [vmem:[#allocation9 + $0xf0] ss:$8 sps:$4 sm:$0xff]  }
 0x133   :  { %v251_v27 = vmax.f32 %v244_v19, 0.0  ;;  %v250_v8 = vmax.f32 %v242_v4, 0.0 }
 0x135   :  { %v255_v33 = vpack.c.bf16 %v251_v27, %v251_v27  ;;  %v254_v53 = vpack.c.bf16 %v250_v8, %v250_v8  ;;  %v113_v16 = vld [vmem:[#allocation2] sm:$0xff] }
 0x136   :  { %v964_v27 = vld [vmem:[%s1623_s12] sm:$0x3] }
 0x203   :  { %v494_v20 = vpop.f32.mrb[8].mxu0 }
 0x204   :  { %v495_v21 = vadd.f32 %v494_v20, %v293_v17  ;;  %v496_v22 = vpop.f32.mrb[9].mxu0  ;;  %v1071_v17 = vld [vmem:[%s1620_s9] ss:$0 sm:$0xff] }
 0x205   :  { %v497_v23 = vadd.f32 %v496_v22, %v297_v18  ;;  %v498_v24 = vpop.f32.mrb[10].mxu0  ;;  %v688_v18 = vmul.f32 %v1071_v17, %v113_v16 }
 0x206   :  { %v501_v25 = vmax.f32 %v495_v21, 0.0  ;;  %v499_v26 = vpop.f32.mrb[11].mxu0 }
 0x207   :  { %v502_v28 = vmax.f32 %v497_v23, 0.0  ;;  %v749_v23 = vld [vmem:[%s1617_s6] sm:$0x3] }
 0x208   :  { %v503_v31 = vpack.c.bf16 %v501_v25, %v501_v25  ;;  %v754_v24 = vrot.slane %v749_v23, %v1547_v54  ;;  %v758_v26 = vrot.slane %v749_v23, %v1555_v56 }
 0x209   :  { %v504_v29 = vpack.c.bf16 %v502_v28, %v502_v28 }
 0x20b   :  { %672 = vmatprep.mubr.bf16.mxu1 %v504_v29 }
 0x20c   :  { %673 = vmatmul.mubr.bf16.vlgmr.msra.gmra.mrb[0].mxu1 %v503_v31  ;;  %v969_v31 = vrot.slane %v964_v27, %v1547_v54  ;;  %v1074_v54 = vld [vmem:[%s1622_s11] ss:$0 sm:$0xff] }
 0x20d   :  { %922 = vmatpush1.bf16.msra.mxu1 %v1215_v30  ;;  %953 = vmatprep.mubr.bf16.mxu1 %v255_v33 }
 0x20e   :  { %923 = vmatprep.subr.bf16.mxu1 %v1220_v32 }
 0x211   :  { %924 = vmatpush1.bf16.msra.mxu1 %v1218_v34 }
 0x212   :  { %925 = vmatprep.subr.bf16.mxu1 %v1223_v35  ;;  %v973_v35 = vrot.slane %v964_v27, %v1555_v56 }
 0x215   :  { %926 = vmatpush1.bf16.msra.mxu1 %v1221_v36  ;;  %v1073_v36 = vld [vmem:[%s1621_s10] ss:$0 sm:$0xff]  ;;  %s1395_s10 = smov [#allocation12]  }
 0x216   :  { %927 = vmatprep.subr.bf16.mxu1 %v1226_v37  ;;  %s1005_s20 = sshll.u32 %s1395_s10, 4  ;;  %s1006_s20 = int_to_ptr.vmem [resolvable:$true] %s1005_s20 }
 0x217   :  { %s1353_s11 = scalar_lea.vmem %s1006_s20, 128  ;;  %p1358_p5 = scmp.lt.s32.totalorder %s1006_s20, %s1006_s20 }
 0x218   :  { %p1354_p4 = scmp.ne.s32.totalorder %s1006_s20, %s1353_s11  ;;  %p1359_p6 = scmp.lt.s32.totalorder %s1353_s11, %s1353_s11 }
 0x219   :  { %928 = vmatpush1.bf16.msra.mxu1 %v1224_v38 }
 0x21a   :  { %929 = vmatprep.subr.bf16.mxu1 %v1229_v39  ;;  %p1360_p7 = por %p1359_p6, %p1358_p5 }
 0x21c   :  { %p1361_p8 = pnand %p1360_p7, %p1354_p4 }
 0x21d   :  { %930 = vmatpush1.bf16.msra.mxu1 %v1227_v40 }
 0x21e   :  { %931 = vmatprep.subr.bf16.mxu1 %v1232_v41 }
 0x221   :  { %932 = vmatpush1.bf16.msra.mxu1 %v1230_v42 }
 0x222   :  { %933 = vmatprep.subr.bf16.mxu1 %v1235_v43  ;;  %v693_v43 = vand.u32 127, %v122_v52 }
 0x224   :  { %vm713_vm2 = vcmp.lt.s32.totalorder %v693_v43, 4  ;;  %vm989_vm3 = vcmp.eq.s32.totalorder %v693_v43, 126  ;;  %vm991_vm4 = vcmp.eq.s32.totalorder %v693_v43, 127 }
 0x225   :  { %934 = vmatpush1.bf16.msra.mxu1 %v1233_v44 }
 0x226   :  { %935 = vmatprep.subr.bf16.mxu1 %v1238_v45 }
 0x229   :  { %936 = vmatpush1.bf16.msra.mxu1 %v1236_v46  ;;  %v1107_v46 = vld [vmem:[#allocation3] ss:$0 sm:$0xff] }
 0x22a   :  { %937 = vmatprep.subr.bf16.mxu1 %v1241_v47 }
 0x22d   :  { %938 = vmatpush1.bf16.msra.mxu1 %v1239_v48 }
 0x22e   :  { %939 = vmatprep.subr.bf16.mxu1 %v1244_v49 }
 0x231   :  { %940 = vmatpush1.bf16.msra.mxu1 %v1242_v50 }
 0x232   :  { %941 = vmatprep.subr.bf16.mxu1 %v1247_v51 }
 0x235   :  { %942 = vmatpush1.bf16.msra.mxu1 %v1245_v57 }
 0x236   :  { %943 = vmatprep.subr.bf16.mxu1 %v1250_v58 }
 0x239   :  { %944 = vmatpush1.bf16.msra.mxu1 %v1248_v59 }
 0x23a   :  { %945 = vmatprep.subr.bf16.mxu1 %v1253_v60 }
 0x23d   :  { %946 = vmatpush1.bf16.msra.mxu1 %v1251_v61 }
 0x23e   :  { %947 = vmatprep.subr.bf16.mxu1 %v1256_v63 }
 0x241   :  { %948 = vmatpush1.bf16.msra.mxu1 %v1254_v0 }
 0x242   :  { %949 = vmatprep.subr.bf16.mxu1 %v1259_v2 }
 0x245   :  { %950 = vmatpush1.bf16.msra.mxu1 %v1257_v3 }
 0x246   :  { %951 = vmatprep.subr.bf16.mxu1 %v1262_v6 }
 0x249   :  { %952 = vmatpush1.bf16.msra.mxu1 %v1260_v7 }
 0x24c   :  { %954 = vmatmul.mubr.bf16.vlgmr.msra.gmra.mrb[4].mxu1 %v254_v53 }
 0x2df   :  { %v1124_v10 = vpop.f32.mrb[0].mxu1 }
 0x2e0   :  { %v1125_v11 = vpop.f32.mrb[1].mxu1 }
 0x2e1   :  { %v1126_v5 = vadd.f32 %v1125_v11, %v1124_v10  ;;  %v1127_v12 = vpop.f32.mrb[2].mxu1 }
 0x2e2   :  { %v1128_v13 = vpop.f32.mrb[3].mxu1 }
 0x2e3   :  { %v675_v15 = vadd.f32 %v1126_v5, %v1054_v14 }
 0x2e5   :  { %1263 = vtanh.f32 %v675_v15 }
 0x2ef   :  { %v1264_v19 = vpop.eup %1263 }
 0x2f0   :  { %v689_v20 = vadd.f32 %v1264_v19, %v688_v18 }
 0x2f2   :  { %v1072_v21 = vclamps-f32 %v689_v20, 1.0 }
 0x2f4   :  { %v694_v22 = vsub.f32 %v1072_v21, %v1264_v19 }
 0x2f6   :  { %v695_v25 = vmul.f32 %v694_v22, %v694_v22 }
 0x2f8   :  { %v696_v32 = vsub.f32 0.0, %v695_v25 }
 0x2fa   :  { %v704_v41 = vmul.f32 %v1073_v36, %v696_v32 }
 0x2fc   :  { %v712_v45 = vsub.f32 %v704_v41, %v1074_v54 }
 0x2fe   :  { %v714_v56 = vsel %vm713_vm2, %v712_v45, 0.0 }
 0x31f   :  { %v955_v28 = vpop.f32.mrb[4].mxu1 }
 0x320   :  { %v956_v29 = vadd.f32 %v955_v28, %v754_v24  ;;  %v957_v30 = vpop.f32.mrb[5].mxu1 }
 0x321   :  { %v958_v33 = vadd.f32 %v957_v30, %v758_v26  ;;  %v959_v34 = vpop.f32.mrb[6].mxu1 }
 0x322   :  { %v962_v37 = vmax.f32 %v956_v29, 0.0  ;;  %v960_v38 = vpop.f32.mrb[7].mxu1 }
 0x323   :  { %v963_v39 = vmax.f32 %v958_v33, 0.0 }
 0x324   :  { %v976_v40 = vmul.f32 %v969_v31, %v962_v37 }
 0x325   :  { %v977_v42 = vmul.f32 %v973_v35, %v963_v39 }
 0x327   :  { %v978_v44 = vadd.f32 %v977_v42, %v976_v40 }
 0x329   :  { %979 = vadd.xlane.f32.xlu0 %v978_v44 }
 0x32d   :  { %715 = vadd.xlane.f32.xlu0 %v714_v56 }
 0x3b6   :  { %v980_v47 = vpop.xlane.xlu0 %979 }
 0x3b7   :  { %v988_v48 = vadd.f32 %v1107_v46, %v980_v47 }
 0x3b9   :  { %994 = vperm.xlu1 %1143, %v988_v48  }
 0x3ba   :  { %v716_v49 = vpop.xlane.xlu0 %715 }
 0x3bb   :  { %v990_v52 = vsel %vm989_vm3, %v716_v49, %v1072_v21 }
 0x438   :  { %v995_v50 = vpop.permute.xlu1 %994 }
 0x439   :  { %v997_v51 = vsel %vm991_vm4, %v995_v50, %v990_v52 }
 0x43a   :  { %998 = vst [vmem:[#allocation12] sm:$0xff] %v997_v51 }
 0x43b   :  { %1364 = shalt.err (!%p1361_p8)
}
 0x43c   :  { %s1365_s25 = scalar_lea.hbm %s1626_s15, 128 }
 0x43d   :  { %p1366_p9 = scmp.ne.s32.totalorder %s1626_s15, %s1365_s25  ;;  %p1369_p10 = scmp.lt.u32.totalorder %s1365_s25, %s1626_s15 }
 0x43f   :  { %p1371_p11 = pnand %p1369_p10, %p1366_p9 }
 0x441   :  { %1374 = shalt.err (!%p1371_p11)
}
 0x442   :  { %1008 = dma.vmem_to_hbm [thread:$0]  %s1006_s20, 128, %s1626_s15, [#allocation6]  }
 0x443   :  { %1381 = dma.done.wait [#allocation6], 128  }
 0x444   :  { %1382 = vsyncadd [#allocation6], 4294967168 }
 0x445   :  { %1012 = vsyncpa [#allocation5], 1 }
 0x446   :  { %1013 = vsyncpa [#allocation8], 1 }
 0x447   :  { %1014 = vsyncpa [#allocation11], 1 }
 0x448   :  { %1015 = vsyncpa [#allocation6], 1 }

</bundles_post_ra>
